<compile_context>
chip_gen: v7x
topology: tpu7x:2x2x1
jax: 0.10.0
libtpu: 0.0.40
codegen_flags: <defaults>
</compile_context>

<pallas_src>
import jax
import jax.numpy as jnp
from jax.experimental import pallas as pl
from jax.experimental.pallas import tpu as pltpu


def _model_kernel(x_ref, w_ref, b_ref, o_ref):
    x = x_ref[0]          # (Din, S) = v1^T   (x1[b], fed untransposed)
    w = w_ref[...]        # (Dout, Din)       PyTorch Linear weight layout
    b = b_ref[...]        # (Dout, 1)         bias as a column

    # v2^T = W @ v1^T + b = W @ x + b.  Din == 2, so unroll the contraction on
    # the VPU as two broadcast-FMAs instead of an MXU push/pop for a K=2 matmul.
    v2t = w[:, 0:1] * x[0:1, :] + w[:, 1:2] * x[1:2, :] + b     # (Dout, S)

    # TODO(synk): original `v3.permute(0, 2, -1, -2)` is invalid for a 3-D
    # tensor and `v3 - v2` does not broadcast; interpreted (as before) as
    # out = v5 @ v3^T with v5 = v3 - cat(v2, v2), which collapses exactly to
    # out = (v1 - v2) @ v1^T.
    e = x - v2t                                                  # (2, S) = (v1 - v2)^T

    # Single contraction producing the output directly; the x1.permute(0,2,1)
    # is folded into the dimension numbers (contract dim 0 of both operands):
    # out = e^T @ x = (v1 - v2) @ v1^T.
    out = jax.lax.dot_general(
        e, x, (((0,), (0,)), ((), ())),
        preferred_element_type=jnp.float32)                      # (S, S)

    o_ref[0] = out.astype(o_ref.dtype)


def model_forward(x1, weight, bias):
    """x1: (B, N, D) float32; weight: (Dout, Din); bias: (Dout,). Returns (B, D, D)."""
    B, N, D = x1.shape          # N = Din, D = S (seq dim after the permute)
    Dout, Din = weight.shape
    S = D
    bias_col = bias.reshape(Dout, 1)

    return pl.pallas_call(
        _model_kernel,
        out_shape=jax.ShapeDtypeStruct((B, S, S), jnp.float32),
        grid=(B,),
        in_specs=[
            pl.BlockSpec((1, N, D), lambda b: (b, 0, 0)),
            pl.BlockSpec((Dout, Din), lambda b: (0, 0)),
            pl.BlockSpec((Dout, 1), lambda b: (0, 0)),
        ],
        out_specs=pl.BlockSpec((1, S, S), lambda b: (b, 0, 0)),
        compiler_params=pltpu.CompilerParams(
            dimension_semantics=("parallel",)),
    )(x1, weight, bias_col)


if __name__ == "__main__":
    key = jax.random.PRNGKey(0)
    k_x, k_w, k_b = jax.random.split(key, 3)

    # Shapes implied by the module: x1 = (1, 2, 2), Linear(2, 2).
    x1 = jax.random.normal(k_x, (1, 2, 2), dtype=jnp.float32)
    weight = jax.random.normal(k_w, (2, 2), dtype=jnp.float32) * 0.5
    bias = jax.random.normal(k_b, (2,), dtype=jnp.float32) * 0.5

    out = model_forward(x1, weight, bias)
    jax.block_until_ready(out)

    # Pure-JAX reference of the same (un-collapsed) interpretation.
    hp = jax.lax.Precision.HIGHEST
    v1 = jnp.transpose(x1, (0, 2, 1))
    v2 = jnp.einsum("bsi,ji->bsj", v1, weight, precision=hp) + bias
    v3 = jnp.concatenate([v1, v2], axis=-1)
    v5 = v3 - jnp.concatenate([v2, v2], axis=-1)
    ref = jnp.einsum("bsk,btk->bst", v5, v3, precision=hp)

    assert out.shape == (1, 2, 2) and out.dtype == jnp.float32
    assert jnp.allclose(out, ref, rtol=1e-4, atol=1e-4), (out, ref)
    print("KERNEL_OK")
</pallas_src>

<mosaic_0001>
module attributes {stable_mosaic.version = 11 : i64} {
  func.func @_model_kernel(%arg0: i32, %arg1: memref<1x2x2xf32, #tpu.memory_space<vmem>>, %arg2: memref<2x2xf32, #tpu.memory_space<vmem>>, %arg3: memref<2x1xf32, #tpu.memory_space<vmem>>, %arg4: memref<1x2x2xf32, #tpu.memory_space<vmem>>) attributes {dimension_semantics = [#tpu.dimension_semantics<parallel>], iteration_bounds = array<i64: 1>, scalar_prefetch = 0 : i64, scratch_operands = 0 : i64, tpu.core_type = #tpu.core_type<tc>, window_params = [{transform_indices = @transform_0, window_bounds = array<i64: 1, 2, 2>}, {pipeline_mode = #tpu.pipeline_mode<synchronous>, transform_indices = @transform_1, window_bounds = array<i64: 2, 2>}, {pipeline_mode = #tpu.pipeline_mode<synchronous>, transform_indices = @transform_2, window_bounds = array<i64: 2, 1>}, {transform_indices = @transform_3, window_bounds = array<i64: 1, 2, 2>}]} {
    %c0 = arith.constant 0 : index
    %c0_0 = arith.constant 0 : index
    %c0_1 = arith.constant 0 : index
    %0 = vector.load %arg1[%c0, %c0_0, %c0_1] : memref<1x2x2xf32, #tpu.memory_space<vmem>>, vector<1x2x2xf32>
    %1 = vector.shape_cast %0 : vector<1x2x2xf32> to vector<2x2xf32>
    %c0_2 = arith.constant 0 : index
    %c0_3 = arith.constant 0 : index
    %2 = vector.load %arg2[%c0_2, %c0_3] : memref<2x2xf32, #tpu.memory_space<vmem>>, vector<2x2xf32>
    %c0_4 = arith.constant 0 : index
    %c0_5 = arith.constant 0 : index
    %3 = vector.load %arg3[%c0_4, %c0_5] : memref<2x1xf32, #tpu.memory_space<vmem>>, vector<2x1xf32>
    %4 = vector.extract_strided_slice %2 {offsets = [0, 0], sizes = [2, 1], strides = [1, 1]} : vector<2x2xf32> to vector<2x1xf32>
    %5 = vector.extract_strided_slice %1 {offsets = [0, 0], sizes = [1, 2], strides = [1, 1]} : vector<2x2xf32> to vector<1x2xf32>
    %6 = vector.broadcast %4 : vector<2x1xf32> to vector<2x2xf32>
    %7 = vector.broadcast %5 : vector<1x2xf32> to vector<2x2xf32>
    %8 = arith.mulf %6, %7 : vector<2x2xf32>
    %9 = vector.extract_strided_slice %2 {offsets = [0, 1], sizes = [2, 1], strides = [1, 1]} : vector<2x2xf32> to vector<2x1xf32>
    %10 = vector.extract_strided_slice %1 {offsets = [1, 0], sizes = [1, 2], strides = [1, 1]} : vector<2x2xf32> to vector<1x2xf32>
    %11 = vector.broadcast %9 : vector<2x1xf32> to vector<2x2xf32>
    %12 = vector.broadcast %10 : vector<1x2xf32> to vector<2x2xf32>
    %13 = arith.mulf %11, %12 : vector<2x2xf32>
    %14 = arith.addf %8, %13 : vector<2x2xf32>
    %15 = vector.broadcast %3 : vector<2x1xf32> to vector<2x2xf32>
    %16 = arith.addf %14, %15 : vector<2x2xf32>
    %17 = arith.subf %1, %16 : vector<2x2xf32>
    %cst = arith.constant dense<0.000000e+00> : vector<2x2xf32>
    %18 = tpu.matmul %17, %1, %cst {dimension_numbers = #tpu.dot_dimension_numbers<[0], [0], [1], [1], [0, 1, 1, 1], [], []>} : vector<2x2xf32>, vector<2x2xf32>, vector<2x2xf32> -> vector<2x2xf32>
    %c0_6 = arith.constant 0 : index
    %c0_7 = arith.constant 0 : index
    %c0_8 = arith.constant 0 : index
    %19 = vector.load %arg4[%c0_6, %c0_7, %c0_8] : memref<1x2x2xf32, #tpu.memory_space<vmem>>, vector<1x2x2xf32>
    %20 = vector.shape_cast %19 : vector<1x2x2xf32> to vector<2x2xf32>
    %21 = vector.shape_cast %18 : vector<2x2xf32> to vector<1x2x2xf32>
    tpu.vector_store %arg4[%c0_6, %c0_7, %c0_8], %21 {strides = array<i32>} : memref<1x2x2xf32, #tpu.memory_space<vmem>>, vector<1x2x2xf32>,
    return
  }
  func.func @transform_0(%arg0: i32) -> (i32, i32, i32) {
    %c0_i32 = arith.constant 0 : i32
    %c0_i32_0 = arith.constant 0 : i32
    %c0_i32_1 = arith.constant 0 : i32
    return %arg0, %c0_i32, %c0_i32_0 : i32, i32, i32
  }
  func.func @transform_1(%arg0: i32) -> (i32, i32) {
    %c0_i32 = arith.constant 0 : i32
    %c0_i32_0 = arith.constant 0 : i32
    %c0_i32_1 = arith.constant 0 : i32
    return %c0_i32, %c0_i32_0 : i32, i32
  }
  func.func @transform_2(%arg0: i32) -> (i32, i32) {
    %c0_i32 = arith.constant 0 : i32
    %c0_i32_0 = arith.constant 0 : i32
    %c0_i32_1 = arith.constant 0 : i32
    return %c0_i32, %c0_i32_0 : i32, i32
  }
  func.func @transform_3(%arg0: i32) -> (i32, i32, i32) {
    %c0_i32 = arith.constant 0 : i32
    %c0_i32_0 = arith.constant 0 : i32
    %c0_i32_1 = arith.constant 0 : i32
    return %arg0, %c0_i32, %c0_i32_0 : i32, i32, i32
  }
}

</mosaic_0001>

<bundles_post_ra>
// kernel: tpu_custom_call.1
= control target key start
LH: loop header
LB: loop body
LE: loop exit
PB: predicated region body
PF: predicated region fallthrough
CT: control target
= control target key end

     0   :  { %v213_v2 = vmov 0   ;;  %s259_s0 = inlined_call_operand.vmem [shape: f32[1,2,2], index: 0, kind: input, shape index: {}]   ;;  %s260_s1 = inlined_call_operand.vmem [shape: f32[2,2], index: 1, kind: input, shape index: {}]   ;;  %s261_s2 = inlined_call_operand.vmem [shape: f32[2,1], index: 2, kind: input, shape index: {}]   ;;  %s262_s3 = inlined_call_operand.hbm [shape: f32[1,2,2], index: 3, kind: output, shape index: {}]  }
   0x1   :  { %v16_v0 = vld [vmem:[%s260_s1] sm:$0x3]  ;;  %185 = vset.pattern.permute.xlu0 %v213_v2  ;;  %187 = vset.pattern.permute.xlu1 %v213_v2 }
   0x2   :  { %v17_v1 = vld [vmem:[%s261_s2] sm:$0x3] }
   0x3   :  { %8 = vsyncpa [#allocation3], 0  ;;  %20 = vperm.xlu0 %185, %v16_v0   ;;  %40 = vperm.xlu1 %187, %v17_v1   ;;  %v214_v3 = vmov 1   ;;  %vm81_vm0 = vcmask 1041408   ;;  %v15_v4 = vld [vmem:[%s259_s0] sm:$0x3]  ;;  %v23_v6 = vlaneseq }
   0x4   :  { %v215_v5 = vmov 0.0   ;;  %vm216_vm1 = vmmov 0   ;;  %vm77_vm2 = vcmask 15360   ;;  %s217_s0 = smov [#allocation2]   ;;  %vm155_vm3 = vcmask 9216  }
   0x5   :  { %175 = vmatprep.subr.mxu0 %v215_v5  ;;  %177 = vmatprep.mubr.msk.f32.mxu0 %vm216_vm1, %v215_v5  ;;  %v24_v7 = vshrl.u32 %v23_v6, 7  ;;  %s163_s1 = sshll.u32 %s217_s0, 4  ;;  %s164_s1 = int_to_ptr.vmem [resolvable:$true] %s163_s1 }
   0x6   :  { %176 = vmatpush3.msk.msra.mxu0 %vm81_vm0, %v15_v4  ;;  %s189_s2 = scalar_lea.vmem %s164_s1, 32  ;;  %p194_p1 = scmp.lt.s32.totalorder %s164_s1, %s164_s1 }
   0x7   :  { %186 = vset.pattern.permute.xlu0 %v214_v3  ;;  %v25_v8 = vsub.s32 0, %v24_v7  ;;  %v34_v9 = vsub.s32 1, %v24_v7  ;;  %p190_p0 = scmp.ne.s32.totalorder %s164_s1, %s189_s2  ;;  %p195_p2 = scmp.lt.s32.totalorder %s189_s2, %s189_s2 }
   0x8   :  { %29 = vperm.xlu0 %186, %v16_v0  }
   0x9   :  { %v26_v11 = vrot.slane %v15_v4, %v25_v8  ;;  %v35_v12 = vrot.slane %v15_v4, %v34_v9  ;;  %p196_p3 = por %p195_p2, %p194_p1 }
   0xb   :  { %p197_p4 = pnand %p196_p3, %p190_p0 }
   0xc   :  { %188 = vset.pattern.permute.xlu0 %v213_v2 }
  0x82   :  { %v21_v10 = vpop.permute.xlu0 %20  ;;  %v41_v16 = vpop.permute.xlu1 %40 }
  0x83   :  { %v27_v14 = vmul.f32 %v26_v11, %v21_v10 }
  0x87   :  { %v30_v13 = vpop.permute.xlu0 %29 }
  0x88   :  { %v36_v15 = vmul.f32 %v35_v12, %v30_v13 }
  0x8a   :  { %v37_v17 = vadd.f32 %v36_v15, %v27_v14 }
  0x8c   :  { %v43_v18 = vadd.f32 %v41_v16, %v37_v17 }
  0x8e   :  { %v44_v19 = vsub.f32 %v15_v4, %v43_v18 }
  0x90   :  { %45 = vxpose.xlu1.b32.start.end [1/1] (short) (narrow) %v44_v19, 8 }
 0x110   :  { %v61_v20 = vpop.trf.xlu1 }
 0x111   :  { %178 = vmatmul.mubr.msk.f32.vlgmr.msra.gmra.mrb[0].mxu0 %vm77_vm2, %v61_v20 }
 0x1e4   :  { %v151_v21 = vpop.f32.mrb[0].mxu0 }
 0x1e5   :  { %156 = vst.msk [vmem:[#allocation2] sm:$0x3] %vm155_vm3, %v151_v21  ;;  %v179_v22 = vpop.f32.mrb[1].mxu0 }
 0x1e6   :  { %200 = shalt.err (!%p197_p4)
}
 0x1e7   :  { %s201_s20 = scalar_lea.hbm %s262_s3, 32 }
 0x1e8   :  { %p202_p5 = scmp.ne.s32.totalorder %s262_s3, %s201_s20  ;;  %p205_p6 = scmp.lt.u32.totalorder %s201_s20, %s262_s3 }
 0x1ea   :  { %p207_p7 = pnand %p205_p6, %p202_p5 }
 0x1ec   :  { %210 = shalt.err (!%p207_p7)
}
 0x1ed   :  { %166 = dma.vmem_to_hbm [thread:$0]  %s164_s1, 32, %s262_s3, [#allocation3]  }
 0x1ee   :  { %211 = dma.done.wait [#allocation3], 32  }
 0x1ef   :  { %212 = vsyncadd [#allocation3], 4294967264 }
 0x1f0   :  { %170 = vsyncpa [#allocation3], 1 }

</bundles_post_ra>
